<compile_context>
chip_gen: v6e
topology: v6e:2x2x1
jax: 0.10.0
libtpu: 0.0.40
codegen_flags: <defaults>
</compile_context>

<pallas_src>
import functools

import jax
import jax.numpy as jnp
from jax.experimental import pallas as pl
from jax.experimental.pallas import tpu as pltpu

ALPHA = 0.5
_MIB = 1 << 20


def _snake_kernel(x_ref, o_ref):
    # x + sin(ALPHA*x)^2 / ALPHA with ALPHA=0.5  ==  x + 2*sin(0.5*x)^2
    # (cancellation-free; sin goes to the EUP slot, so the kernel stays HBM-bound).
    x = x_ref[...].astype(jnp.float32)
    s = jnp.sin(ALPHA * x)
    o_ref[...] = (x + 2.0 * (s * s)).astype(o_ref.dtype)


def _vmem_capacity_bytes() -> int:
    """Physical VMEM per TensorCore (trace-time query, conservative fallback)."""
    try:
        cap = getattr(pltpu.get_tpu_info(), "vmem_capacity_bytes", None)
        if cap:
            return int(cap)
    except Exception:
        pass
    return 64 * _MIB  # v7x per-TC size; a safe lower bound for v5e/v6e as well


def _derive_sizes(target_block_bytes):
    cap = _vmem_capacity_bytes()
    # ~3/4 of physical VMEM, clamped to [32, 64] MiB: 48 MiB on v7x (64 MiB/TC),
    # 64 MiB on v5e/v6e (128 MiB) -- leaves headroom for compiler scratch.
    vmem_limit = int(min(max((cap * 3) // 4, 32 * _MIB), 64 * _MIB))
    if target_block_bytes is None:
        # Resident set = 2 buffers (double-buffer) x (in + out) x block, + ~8 MiB slack.
        target_block_bytes = int(min(8 * _MIB, max(2 * _MIB, (vmem_limit - 8 * _MIB) // 4)))
    return vmem_limit, int(target_block_bytes)


def _snake_2d(flat, lane, target_block_bytes):
    """Streaming kernel over a flat array whose length is a multiple of `lane`."""
    dtype = flat.dtype
    itemsize = jnp.dtype(dtype).itemsize
    m = flat.shape[0] // lane
    x2d = flat.reshape(m, lane)
    n = m * lane

    # Sublane multiple for legal row tiling (8 for 32-bit, 16 for 16-bit, 32 for 8-bit).
    sub_mult = 8 if itemsize >= 4 else (16 if itemsize == 2 else 32)

    vmem_limit, block_bytes = _derive_sizes(target_block_bytes)
    rows_per_block = max(
        sub_mult, (block_bytes // (lane * itemsize) // sub_mult) * sub_mult
    )

    total_bytes = n * itemsize
    if rows_per_block >= m:
        # Whole array fits in one block. For anything bigger than ~2 MiB still split into
        # >= 4 blocks so DMA/compute overlap and (on v7x) both TensorCores get work.
        if total_bytes > 2 * _MIB and m >= 4 * sub_mult:
            tile_rows = max(sub_mult, (m // 4 // sub_mult) * sub_mult)
        else:
            tile_rows = m  # full-dim block is always legal
    else:
        tile_rows = rows_per_block

    grid = pl.cdiv(m, tile_rows)

    out2d = pl.pallas_call(
        _snake_kernel,
        out_shape=jax.ShapeDtypeStruct((m, lane), dtype),
        grid_spec=pltpu.PrefetchScalarGridSpec(
            num_scalar_prefetch=0,
            grid=(grid,),
            in_specs=[pl.BlockSpec((tile_rows, lane), lambda i: (i, 0))],
            out_specs=pl.BlockSpec((tile_rows, lane), lambda i: (i, 0)),
        ),
        compiler_params=pltpu.CompilerParams(
            # TODO(synk): if an xprof trace on v7x shows one TensorCore idle, switch to
            # pltpu.CORE_PARALLEL (or an explicit 2-way leading grid axis).
            dimension_semantics=("parallel",),
            vmem_limit_bytes=vmem_limit,
        ),
        cost_estimate=pl.CostEstimate(
            flops=4 * n, transcendentals=n, bytes_accessed=2 * n * itemsize
        ),
    )(x2d)
    return out2d.reshape(-1)


@functools.partial(jax.jit, static_argnames=("target_block_bytes",))
def snake(x: jax.Array, *, target_block_bytes=None) -> jax.Array:
    """Elementwise Snake activation (alpha = 0.5) as a Pallas TPU kernel."""
    orig_shape = x.shape
    dtype = x.dtype
    flat = x.reshape(-1)
    n = flat.shape[0]
    if n == 0:
        return x

    # Widest lane width (multiple of 128) dividing n -> no padding, no extra copies.
    lane = next((c for c in (1024, 512, 256, 128) if n % c == 0), None)
    if lane is not None:
        return _snake_2d(flat, lane, target_block_bytes).reshape(orig_shape)

    # Ragged size (rare): kernel on the 128-aligned prefix; the <128-element tail is
    # computed in plain jnp.  Avoids the old full-array pad + trailing-slice round trip.
    # TODO(synk): fold the tail into the kernel as a masked final block to also drop the
    # concatenate copy.
    lane = 128
    prefix_len = (n // lane) * lane
    parts = []
    if prefix_len:
        parts.append(_snake_2d(flat[:prefix_len], lane, target_block_bytes))
    tail = flat[prefix_len:].astype(jnp.float32)
    st = jnp.sin(ALPHA * tail)
    parts.append((tail + 2.0 * (st * st)).astype(dtype))
    out_flat = parts[0] if len(parts) == 1 else jnp.concatenate(parts)
    return out_flat.reshape(orig_shape)


if __name__ == "__main__":
    key = jax.random.PRNGKey(0)
    k1, k2, k3 = jax.random.split(key, 3)

    # Small NCHW input, matching the PyTorch module's typical usage.
    x = jax.random.normal(k1, (2, 4, 16, 16), dtype=jnp.float32)
    y = jax.block_until_ready(snake(x))
    y_ref = x + jnp.sin(ALPHA * x) ** 2 / ALPHA
    assert y.shape == x.shape and y.dtype == x.dtype
    assert jnp.allclose(y, y_ref, atol=1e-5, rtol=1e-5)

    # Ragged element count: exercises the prefix + tail path (no pad/slice copies).
    x2 = jax.random.normal(k2, (3, 5, 7, 11), dtype=jnp.float32)
    y2 = jax.block_until_ready(snake(x2))
    y2_ref = x2 + jnp.sin(ALPHA * x2) ** 2 / ALPHA
    assert jnp.allclose(y2, y2_ref, atol=1e-5, rtol=1e-5)

    # Moderate (8 MiB) input: exercises the multi-block, pipelined, parallel grid.
    x3 = jax.random.normal(k3, (8, 16, 128, 128), dtype=jnp.float32)
    y3 = jax.block_until_ready(snake(x3))
    y3_ref = x3 + jnp.sin(ALPHA * x3) ** 2 / ALPHA
    assert jnp.allclose(y3, y3_ref, atol=1e-5, rtol=1e-5)

    print("KERNEL_OK")
</pallas_src>

<mosaic_0001>
module attributes {stable_mosaic.version = 11 : i64} {
  func.func @_snake_kernel(%arg0: i32, %arg1: memref<2x1024xf32, #tpu.memory_space<vmem>>, %arg2: memref<2x1024xf32, #tpu.memory_space<vmem>>) attributes {dimension_semantics = [#tpu.dimension_semantics<parallel>], iteration_bounds = array<i64: 1>, scalar_prefetch = 0 : i64, scratch_operands = 0 : i64, tpu.core_type = #tpu.core_type<tc>, window_params = [{transform_indices = @transform_0, window_bounds = array<i64: 2, 1024>}, {transform_indices = @transform_1, window_bounds = array<i64: 2, 1024>}]} {
    %c0 = arith.constant 0 : index
    %c0_0 = arith.constant 0 : index
    %0 = vector.load %arg1[%c0, %c0_0] : memref<2x1024xf32, #tpu.memory_space<vmem>>, vector<2x1024xf32>
    %cst = arith.constant 5.000000e-01 : f32
    %1 = vector.broadcast %cst : f32 to vector<2x1024xf32>
    %2 = arith.mulf %1, %0 : vector<2x1024xf32>
    %3 = math.sin %2 : vector<2x1024xf32>
    %4 = arith.mulf %3, %3 : vector<2x1024xf32>
    %cst_1 = arith.constant 2.000000e+00 : f32
    %5 = vector.broadcast %cst_1 : f32 to vector<2x1024xf32>
    %6 = arith.mulf %5, %4 : vector<2x1024xf32>
    %7 = arith.addf %0, %6 : vector<2x1024xf32>
    %c0_2 = arith.constant 0 : index
    %c0_3 = arith.constant 0 : index
    %8 = vector.load %arg2[%c0_2, %c0_3] : memref<2x1024xf32, #tpu.memory_space<vmem>>, vector<2x1024xf32>
    tpu.vector_store %arg2[%c0_2, %c0_3], %7 {strides = array<i32>} : memref<2x1024xf32, #tpu.memory_space<vmem>>, vector<2x1024xf32>,
    return
  }
  func.func @transform_0(%arg0: i32) -> (i32, i32) {
    %c0_i32 = arith.constant 0 : i32
    %c0_i32_0 = arith.constant 0 : i32
    return %arg0, %c0_i32 : i32, i32
  }
  func.func @transform_1(%arg0: i32) -> (i32, i32) {
    %c0_i32 = arith.constant 0 : i32
    %c0_i32_0 = arith.constant 0 : i32
    return %arg0, %c0_i32 : i32, i32
  }
}

</mosaic_0001>

<bundles_post_ra>
// kernel: snake.1
= control target key start
LH: loop header
LB: loop body
LE: loop exit
PB: predicated region body
PF: predicated region fallthrough
CT: control target
= control target key end

     0   :  { %v262_v26 = vmov 683565275   ;;  %v263_v28 = vmov 2475754826   ;;  %v264_v30 = vmov 2131351028   ;;  %s376_s0 = inlined_call_operand.vmem [shape: f32[2,1024], index: 0, kind: input, shape index: {}]   ;;  %s377_s1 = inlined_call_operand.vmem [shape: f32[2,1024], index: 1, kind: output, shape index: {}]  }
   0x1   :  { %v281_v0 = vld [vmem:[%s376_s0] sm:$0xff]  ;;  %v286_v1 = vld [vmem:[%s376_s0 + $0x8] sm:$0xff]  ;;  %v265_v32 = vmov 2102212464   ;;  %v266_v34 = vmov 920167782  }
   0x2   :  { %v289_v2 = vmul.f32 0.5, %v281_v0  ;;  %v292_v3 = vmul.f32 0.5, %v286_v1  ;;  %v267_v42 = vmov 1326507024  }
   0x4   :  { %v12_v4 = vand.u32 2147483647, %v289_v2  ;;  %v15_v5 = vand.u32 2139095040, %v289_v2  ;;  %v116_v6 = vand.u32 2147483647, %v292_v3  ;;  %v119_v7 = vand.u32 2139095040, %v292_v3 }
   0x5   :  { %vm14_vm14 = vcmp.lt.s32.totalorder %v289_v2, 0 }
   0x6   :  { %v16_v8 = vshrl.u32 %v15_v5, 23  ;;  %v19_v9 = vand.u32 8388607, %v12_v4  ;;  %v120_v10 = vshrl.u32 %v119_v7, 23  ;;  %v123_v11 = vand.u32 8388607, %v116_v6 }
   0x7   :  { %vm353_vm15 = vcmp.le.f32.partialorder %v12_v4, 0.7853982 }
   0x8   :  { %v232_v12 = vadd.s32 4294967169, %v16_v8  ;;  %v236_v13 = vadd.s32 4294967169, %v120_v10  ;;  %v20_v15 = vor.u32 8388608, %v19_v9  ;;  %v124_v16 = vor.u32 8388608, %v123_v11 }
   0xa   :  { %v22_v14 = vadd.s32 1, %v232_v12  ;;  %v126_v17 = vadd.s32 1, %v236_v13  ;;  %v302_v22 = vshll.u32 %v20_v15, 8  ;;  %v304_v24 = vshll.u32 %v124_v16, 8 }
   0xc   :  { %vm23_vm0 = vcmp.gt.s32.totalorder %v22_v14, 0  ;;  %vm127_vm1 = vcmp.gt.s32.totalorder %v126_v17, 0 }
   0xd   :  { %v24_v18 = vsel %vm23_vm0, %v22_v14, 0  ;;  %v128_v21 = vsel %vm127_vm1, %v126_v17, 0  ;;  %vm118_vm0 = vcmp.lt.s32.totalorder %v292_v3, 0  ;;  %vm117_vm1 = vcmp.le.f32.partialorder %v116_v6, 0.7853982 }
   0xe   :  { %v25_v19 = vshrl.u32 %v24_v18, 5  ;;  %v26_v20 = vand.u32 31, %v24_v18  ;;  %v130_v23 = vand.u32 31, %v128_v21  ;;  %v306_v36 = vshrl.u32 %v128_v21, 5 }
  0x10   :  { %v27_v25 = vsub.s32 32, %v26_v20  ;;  %v29_v27 = vshll.u32 %v262_v26, %v26_v20  ;;  %v32_v29 = vshll.u32 %v263_v28, %v26_v20  ;;  %v35_v31 = vshll.u32 %v264_v30, %v26_v20 }
  0x11   :  { %v38_v33 = vshll.u32 %v265_v32, %v26_v20  ;;  %v41_v35 = vshll.u32 %v266_v34, %v26_v20  ;;  %vm44_vm2 = vcmp.lt.s32.totalorder %v25_v19, 1  ;;  %vm45_vm3 = vcmp.lt.s32.totalorder %v25_v19, 2 }
  0x12   :  { %v28_v37 = vshrl.u32 %v262_v26, %v27_v25  ;;  %v30_v38 = vshrl.u32 %v263_v28, %v27_v25  ;;  %v33_v39 = vshrl.u32 %v264_v30, %v27_v25  ;;  %v36_v40 = vshrl.u32 %v265_v32, %v27_v25 }
  0x13   :  { %v39_v41 = vshrl.u32 %v266_v34, %v27_v25  ;;  %v42_v43 = vshrl.u32 %v267_v42, %v27_v25  ;;  %vm47_vm4 = vcmp.lt.s32.totalorder %v25_v19, 4  ;;  %v131_v47 = vsub.s32 32, %v130_v23 }
  0x14   :  { %v31_v44 = vor.u32 %v30_v38, %v29_v27  ;;  %v34_v45 = vor.u32 %v33_v39, %v32_v29  ;;  %v37_v46 = vor.u32 %v36_v40, %v35_v31  ;;  %vm46_vm5 = vcmp.lt.s32.totalorder %v25_v19, 3 }
  0x15   :  { %v40_v48 = vor.u32 %v39_v41, %v38_v33  ;;  %v43_v49 = vor.u32 %v42_v43, %v41_v35  ;;  %v133_v50 = vshll.u32 %v262_v26, %v130_v23  ;;  %v136_v58 = vshll.u32 %v263_v28, %v130_v23 }
  0x16   :  { %v48_v51 = vsel %vm44_vm2, %v28_v37, %v31_v44  ;;  %v49_v52 = vsel %vm47_vm4, %v37_v46, 2102212464  ;;  %v52_v53 = vsel %vm44_vm2, %v31_v44, %v34_v45  ;;  %v56_v54 = vsel %vm44_vm2, %v34_v45, %v37_v46 }
  0x17   :  { %v50_v55 = vsel %vm46_vm5, %v34_v45, %v49_v52  ;;  %v53_v56 = vsel %vm47_vm4, %v40_v48, 920167782  ;;  %v57_v57 = vsel %vm47_vm4, %v43_v49, 1326507024  ;;  %v132_v61 = vshrl.u32 %v262_v26, %v131_v47 }
  0x18   :  { %v54_v59 = vsel %vm46_vm5, %v37_v46, %v53_v56  ;;  %v58_v60 = vsel %vm46_vm5, %v40_v48, %v57_v57  ;;  %v134_v62 = vshrl.u32 %v263_v28, %v131_v47  ;;  %v51_v63 = vsel %vm45_vm3, %v48_v51, %v50_v55 }
  0x19   :  { %v55_v5 = vsel %vm45_vm3, %v52_v53, %v54_v59  ;;  %v59_v7 = vsel %vm45_vm3, %v56_v54, %v58_v60  ;;  %v137_v8 = vshrl.u32 %v264_v30, %v131_v47  ;;  %v139_v15 = vshll.u32 %v264_v30, %v130_v23 }
  0x1a   :  { %v315_v9 = vmul.u32.u64.low %v302_v22, %v59_v7  ;;  %v316_v10 = vmul.u32.u64.high %v302_v22, %v59_v7, %v315_v9  ;;  %v319_v11 = vmul.u32.u64.low %v302_v22, %v55_v5  ;;  %v320_v12 = vmul.u32.u64.high %v302_v22, %v55_v5, %v319_v11 }
  0x1b   :  { %v135_v13 = vor.u32 %v134_v62, %v133_v50  ;;  %v138_v14 = vor.u32 %v137_v8, %v136_v58  ;;  %v140_v16 = vshrl.u32 %v265_v32, %v131_v47  ;;  %v142_v17 = vshll.u32 %v265_v32, %v130_v23 }
  0x1c   :  { %v143_v18 = vshrl.u32 %v266_v34, %v131_v47  ;;  %v145_v20 = vshll.u32 %v266_v34, %v130_v23  ;;  %v146_v21 = vshrl.u32 %v267_v42, %v131_v47  ;;  %v67_v19 = vmul.u32 %v302_v22, %v51_v63 }
  0x1d   :  { %v141_v25 = vor.u32 %v140_v16, %v139_v15  ;;  %vm148_vm6 = vcmp.lt.s32.totalorder %v306_v36, 1  ;;  %vm149_vm7 = vcmp.lt.s32.totalorder %v306_v36, 2  ;;  %vm69_vm8 = vc.u32 %v316_v10, %v319_v11 }
  0x1e   :  { %v70_v26 = vadd.s32 1, %v320_v12  ;;  %v144_v27 = vor.u32 %v143_v18, %v142_v17  ;;  %vm150_vm9 = vcmp.lt.s32.totalorder %v306_v36, 3  ;;  %v147_v28 = vor.u32 %v146_v21, %v145_v20 }
  0x1f   :  { %vm151_vm10 = vcmp.lt.s32.totalorder %v306_v36, 4  ;;  %v152_v29 = vsel %vm148_vm6, %v132_v61, %v135_v13  ;;  %v156_v23 = vsel %vm148_vm6, %v135_v13, %v138_v14  ;;  %v160_v32 = vsel %vm148_vm6, %v138_v14, %v141_v25 }
  0x20   :  { %v71_v30 = vsel %vm69_vm8, %v70_v26, %v320_v12  ;;  %v153_v22 = vsel %vm151_vm10, %v141_v25, 2102212464  ;;  %v157_v31 = vsel %vm151_vm10, %v144_v27, 920167782  ;;  %v161_v37 = vsel %vm151_vm10, %v147_v28, 1326507024 }
  0x21   :  { %v72_v33 = vadd.s32 %v71_v30, %v67_v19  ;;  %v154_v34 = vsel %vm150_vm9, %v138_v14, %v153_v22  ;;  %v158_v35 = vsel %vm150_vm9, %v141_v25, %v157_v31  ;;  %v162_v40 = vsel %vm150_vm9, %v144_v27, %v161_v37 }
  0x22   :  { %v155_v38 = vsel %vm149_vm7, %v152_v29, %v154_v34  ;;  %v159_v39 = vsel %vm149_vm7, %v156_v23, %v158_v35  ;;  %v163_v42 = vsel %vm149_vm7, %v160_v32, %v162_v40  ;;  %v68_v61 = vadd.s32 %v319_v11, %v316_v10 }
  0x23   :  { %v73_v41 = vadd.s32 536870912, %v72_v33  ;;  %v337_v43 = vmul.u32.u64.low %v304_v24, %v159_v39  ;;  %v338_v44 = vmul.u32.u64.high %v304_v24, %v159_v39, %v337_v43  ;;  %v171_v48 = vmul.u32 %v304_v24, %v155_v38 }
  0x24   :  { %v341_v45 = vmul.u32.u64.low %v304_v24, %v163_v42  ;;  %v342_v46 = vmul.u32.u64.high %v304_v24, %v163_v42, %v341_v45  ;;  %vm104_vm5 = vweird.f32 %v289_v2  ;;  %vm208_vm9 = vweird.f32 %v292_v3 }
  0x25   :  { %v74_v47 = vshrl.u32 %v73_v41, 30  ;;  %v174_v50 = vadd.s32 1, %v338_v44 }
  0x26   :  { %vm173_vm11 = vc.u32 %v342_v46, %v337_v43  ;;  %v172_v20 = vadd.s32 %v337_v43, %v342_v46 }
  0x27   :  { %v75_v49 = vshll.u32 %v74_v47, 30  ;;  %v175_v36 = vsel %vm173_vm11, %v174_v50, %v338_v44  ;;  %v98_v27 = vsub.s32 4, %v74_v47 }
  0x28   :  { %v176_v52 = vadd.s32 %v175_v36, %v171_v48 }
  0x29   :  { %v76_v51 = vsub.s32 %v72_v33, %v75_v49  ;;  %v99_v33 = vsel %vm14_vm14, %v98_v27, %v74_v47 }
  0x2a   :  { %v177_v54 = vadd.s32 536870912, %v176_v52  ;;  %v101_v4 = vsel %vm353_vm15, 0, %v99_v33 }
  0x2b   :  { %v78_v53 = vsub.s32 0, %v76_v51  ;;  %v105_v41 = vadd.s32 3, %v101_v4 }
  0x2c   :  { %v178_v56 = vshrl.u32 %v177_v54, 30 }
  0x2d   :  { %v233_v55 = vmin.u32 %v78_v53, %v76_v51  ;;  %v106_v46 = vand.u32 3, %v105_v41 }
  0x2e   :  { %v179_v58 = vshll.u32 %v178_v56, 30  ;;  %v202_v40 = vsub.s32 4, %v178_v56 }
  0x2f   :  { %v80_v57 = vclz %v233_v55  ;;  %vm111_vm2 = vcmp.eq.s32.totalorder %v106_v46, 2  ;;  %vm108_vm3 = vcmp.eq.s32.totalorder %v106_v46, 0  ;;  %vm107_vm4 = vcmp.lt.s32.totalorder %v106_v46, 2 }
  0x30   :  { %v180_v60 = vsub.s32 %v176_v52, %v179_v58  ;;  %v203_v44 = vsel %vm118_vm0, %v202_v40, %v178_v56 }
  0x31   :  { %v234_v59 = vadd.s32 4294967294, %v80_v57  ;;  %v205_v47 = vsel %vm117_vm1, 0, %v203_v44 }
  0x32   :  { %v182_v62 = vsub.s32 0, %v180_v60 }
  0x33   :  { %vm235_vm12 = vcmp.lt.s32.totalorder %v234_v59, 0 }
  0x34   :  { %v83_v24 = vsel %vm235_vm12, 0, %v234_v59  ;;  %v237_v8 = vmin.u32 %v182_v62, %v180_v60 }
  0x35   :  { %v84_v63 = vsub.s32 32, %v83_v24  ;;  %v85_v5 = vshll.u32 %v76_v51, %v83_v24  ;;  %v88_v7 = vsub.s32 4294967266, %v83_v24  ;;  %v209_v51 = vadd.s32 3, %v205_v47 }
  0x36   :  { %v184_v13 = vclz %v237_v8 }
  0x37   :  { %v86_v9 = vshrl.u32 %v68_v61, %v84_v63  ;;  %v89_v12 = vadd.s32 127, %v88_v7  ;;  %v210_v54 = vand.u32 3, %v209_v51 }
  0x38   :  { %v238_v16 = vadd.s32 4294967294, %v184_v13 }
  0x39   :  { %v87_v14 = vor.u32 %v86_v9, %v85_v5  ;;  %v90_v15 = vshll.u32 %v89_v12, 23  ;;  %vm215_vm6 = vcmp.eq.s32.totalorder %v210_v54, 2  ;;  %vm212_vm7 = vcmp.eq.s32.totalorder %v210_v54, 0 }
  0x3a   :  { %vm239_vm13 = vcmp.lt.s32.totalorder %v238_v16, 0  ;;  %vm211_vm8 = vcmp.lt.s32.totalorder %v210_v54, 2 }
  0x3b   :  { %v91_v17 = vor.u32 4788187, %v90_v15  ;;  %v94_v18 = vcvt.s32.f32 %v87_v14  ;;  %v187_v10 = vsel %vm239_vm13, 0, %v238_v16 }
  0x3c   :  { %v188_v11 = vsub.s32 32, %v187_v10  ;;  %v189_v19 = vshll.u32 %v180_v60, %v187_v10  ;;  %v192_v25 = vsub.s32 4294967266, %v187_v10 }
  0x3d   :  { %v92_v21 = vand.u32 2147483647, %v91_v17 }
  0x3e   :  { %v190_v28 = vshrl.u32 %v172_v20, %v188_v11  ;;  %v193_v29 = vadd.s32 127, %v192_v25 }
  0x3f   :  { %v95_v26 = vmul.f32 %v94_v18, %v92_v21 }
  0x40   :  { %v191_v22 = vor.u32 %v190_v28, %v189_v19  ;;  %v194_v31 = vshll.u32 %v193_v29, 23 }
  0x41   :  { %v96_v30 = vxor.u32 2147483648, %v95_v26 }
  0x42   :  { %v195_v35 = vor.u32 4788187, %v194_v31  ;;  %v198_v37 = vcvt.s32.f32 %v191_v22 }
  0x43   :  { %v97_v32 = vsel %vm14_vm14, %v96_v30, %v95_v26 }
  0x44   :  { %v100_v34 = vsel %vm353_vm15, %v289_v2, %v97_v32  ;;  %v196_v38 = vand.u32 2147483647, %v195_v35 }
  0x45   :  { %254 = vcosq.f32 %v100_v34 }
  0x46   :  { %256 = vsinq.f32 %v100_v34  ;;  %v199_v39 = vmul.f32 %v198_v37, %v196_v38 }
  0x48   :  { %v200_v42 = vxor.u32 2147483648, %v199_v39 }
  0x4a   :  { %v201_v43 = vsel %vm118_vm0, %v200_v42, %v199_v39 }
  0x4b   :  { %v204_v45 = vsel %vm117_vm1, %v292_v3, %v201_v43 }
  0x4c   :  { %258 = vcosq.f32 %v204_v45 }
  0x4d   :  { %260 = vsinq.f32 %v204_v45 }
  0x52   :  { %v255_v48 = vpop.eup %254 }
  0x53   :  { %v257_v49 = vpop.eup %256  ;;  %v112_v50 = vxor.u32 2147483648, %v255_v48 }
  0x54   :  { %v109_v36 = vxor.u32 2147483648, %v257_v49 }
  0x55   :  { %v113_v6 = vsel %vm111_vm2, %v112_v50, %v257_v49 }
  0x56   :  { %v110_v52 = vsel %vm108_vm3, %v255_v48, %v109_v36 }
  0x57   :  { %v114_v53 = vsel %vm107_vm4, %v110_v52, %v113_v6 }
  0x58   :  { %v115_v55 = vsel %vm104_vm5, nan, %v114_v53 }
  0x59   :  { %v220_v56 = vmul.f32 %v115_v55, %v115_v55  ;;  %v259_v57 = vpop.eup %258 }
  0x5a   :  { %v261_v59 = vpop.eup %260  ;;  %v216_v60 = vxor.u32 2147483648, %v259_v57 }
  0x5b   :  { %v222_v58 = vmul.f32 2.0, %v220_v56  ;;  %v213_v61 = vxor.u32 2147483648, %v261_v59 }
  0x5c   :  { %v217_v62 = vsel %vm215_vm6, %v216_v60, %v261_v59 }
  0x5d   :  { %v224_v24 = vadd.f32 %v222_v58, %v281_v0  ;;  %v214_v2 = vsel %vm212_vm7, %v259_v57, %v213_v61 }
  0x5e   :  { %v218_v63 = vsel %vm211_vm8, %v214_v2, %v217_v62 }
  0x5f   :  { %226 = vst [vmem:[%s377_s1] sm:$0xff] %v224_v24  ;;  %v219_v5 = vsel %vm208_vm9, nan, %v218_v63 }
  0x60   :  { %v221_v7 = vmul.f32 %v219_v5, %v219_v5 }
  0x62   :  { %v223_v8 = vmul.f32 2.0, %v221_v7 }
  0x64   :  { %v225_v9 = vadd.f32 %v223_v8, %v286_v1 }
  0x66   :  { %227 = vst [vmem:[%s377_s1 + $0x8] sm:$0xff] %v225_v9 }

</bundles_post_ra>
